<compile_context>
chip_gen: v6e
topology: v6e:2x2x1
jax: 0.10.0
libtpu: 0.0.40
codegen_flags: <defaults>
</compile_context>

<pallas_src>
import functools

import jax
import jax.numpy as jnp
from jax.experimental import pallas as pl
from jax.experimental.pallas import tpu as pltpu

LANE = 128
MAX_TM = 512  # conservative M tile: fits comfortably on v5e/v6e/v7x VMEM

VMEM_SPEC = pl.BlockSpec(memory_space=pltpu.MemorySpace.VMEM)

GRID_PARAMS = pltpu.CompilerParams(
    dimension_semantics=("parallel",),
    vmem_limit_bytes=32 * 1024 * 1024,
)
NOGRID_PARAMS = pltpu.CompilerParams(vmem_limit_bytes=32 * 1024 * 1024)


def _round_up(x, m):
    return (x + m - 1) // m * m


# ---------------------------------------------------------------------------
# Pallas kernels
# ---------------------------------------------------------------------------
def _conv_gemm_kernel(x_ref, w_ref, b_ref, o_ref, *, relu):
    # (tm, K) bf16 @ (K, Coutp) bf16 -> f32 acc on the MXU, + folded bias, ReLU.
    acc = jnp.dot(x_ref[...], w_ref[...], preferred_element_type=jnp.float32)
    acc = acc + b_ref[...]
    if relu:
        acc = jnp.maximum(acc, 0.0)
    o_ref[...] = acc


def _conv_gemm_res_kernel(x_ref, w_ref, b_ref, s_ref, o_ref, *, relu):
    # Same as above, but with the residual shortcut fused into the epilogue.
    acc = jnp.dot(x_ref[...], w_ref[...], preferred_element_type=jnp.float32)
    acc = acc + b_ref[...] + s_ref[...]
    if relu:
        acc = jnp.maximum(acc, 0.0)
    o_ref[...] = acc


def _max_taps_kernel(*refs):
    # refs = (tap_0 ... tap_{kk-1}, out); elementwise max over taps,
    # all operands lane-dense (-1, 128).
    ins, o_ref = refs[:-1], refs[-1]
    acc = ins[0][...]
    for r in ins[1:]:
        acc = jnp.maximum(acc, r[...])
    o_ref[...] = acc


def _avgpool_fc_kernel(x_ref, w_ref, b_ref, o_ref, *, inv_hw):
    # Fused AdaptiveAvgPool2d((1,1)) + Flatten + Linear.
    pooled = jnp.sum(x_ref[...], axis=1) * inv_hw            # (N, C) f32
    o_ref[...] = (
        jnp.dot(pooled, w_ref[...], preferred_element_type=jnp.float32)
        + b_ref[...]
    )


# ---------------------------------------------------------------------------
# Plain-JAX glue: im2col patch extraction (stride handled here)
# ---------------------------------------------------------------------------
def _extract_patches(x, kh, kw, stride, pad):
    n, h, w, c = x.shape
    xp = jnp.pad(x, ((0, 0), (pad, pad), (pad, pad), (0, 0)))
    hp, wp = h + 2 * pad, w + 2 * pad
    ho = (hp - kh) // stride + 1
    wo = (wp - kw) // stride + 1
    cols = []
    for i in range(kh):
        for j in range(kw):
            sl = jax.lax.slice(
                xp,
                (0, i, j, 0),
                (n, i + (ho - 1) * stride + 1, j + (wo - 1) * stride + 1, c),
                (1, stride, stride, 1),
            )
            cols.append(sl)
    # (n, ho, wo, kh*kw, c) flattened so ordering matches weight (kh, kw, cin).
    patches = jnp.stack(cols, axis=3).reshape(n * ho * wo, kh * kw * c)
    return patches, ho, wo


# ---------------------------------------------------------------------------
# Conv (+folded BN) (+optional fused residual) as a tiled GEMM
# ---------------------------------------------------------------------------
def _conv_gemm(x, p, stride, relu, shortcut_flat=None):
    """Returns (out_nhwc, out_flat_padded).

    out_flat_padded is the raw (Mpad, Coutp) f32 kernel output (padded rows /
    channels included) so it can be reused directly as a fused shortcut.
    """
    wp, bp = p["wp"], p["bp"]            # (K, Coutp) bf16, (1, Coutp) f32
    cout, k = p["cout"], p["k"]
    pad = k // 2                         # TODO(synk): Conv_Block padding assumed 'same' (k//2)
    coutp = wp.shape[1]

    patches, ho, wo = _extract_patches(x, k, k, stride, pad)
    m, kk = patches.shape

    # M tiling: whole-M single block when small, otherwise 512-row tiles.
    m8 = _round_up(m, 8)
    tm = m8 if m8 <= MAX_TM else MAX_TM
    mpad = _round_up(m, tm)
    if mpad != m:
        patches = jnp.pad(patches, ((0, mpad - m), (0, 0)))
    patches = patches.astype(jnp.bfloat16)

    in_specs = [
        pl.BlockSpec((tm, kk), lambda i: (i, 0)),       # streamed patch tiles
        pl.BlockSpec((kk, coutp), lambda i: (0, 0)),    # resident weights
        pl.BlockSpec((1, coutp), lambda i: (0, 0)),     # resident folded bias
    ]
    args = [patches, wp, bp]

    if shortcut_flat is not None:
        sm = shortcut_flat.shape[0]
        if sm < mpad:
            shortcut_flat = jnp.pad(shortcut_flat, ((0, mpad - sm), (0, 0)))
        elif sm > mpad:
            shortcut_flat = shortcut_flat[:mpad]
        in_specs.append(pl.BlockSpec((tm, coutp), lambda i: (i, 0)))
        args.append(shortcut_flat.astype(jnp.float32))
        kernel = functools.partial(_conv_gemm_res_kernel, relu=relu)
    else:
        kernel = functools.partial(_conv_gemm_kernel, relu=relu)

    out_flat = pl.pallas_call(
        kernel,
        out_shape=jax.ShapeDtypeStruct((mpad, coutp), jnp.float32),
        grid=(mpad // tm,),
        in_specs=in_specs,
        out_specs=pl.BlockSpec((tm, coutp), lambda i: (i, 0)),
        compiler_params=GRID_PARAMS,
    )(*args)

    n = x.shape[0]
    out = out_flat[:m, :cout].reshape(n, ho, wo, cout)
    return out, out_flat


def conv_block(x, p, stride, relu):
    out, _ = _conv_gemm(x, p, stride, relu)
    return out


# ---------------------------------------------------------------------------
# MaxPool2d((k,k), stride) — no padding, single lane-dense max kernel
# ---------------------------------------------------------------------------
def maxpool2d(x, k, stride):
    n, h, w, c = x.shape
    ho = (h - k) // stride + 1
    wo = (w - k) // stride + 1
    total = n * ho * wo * c
    tpad = _round_up(total, 8 * LANE)

    taps = []
    for i in range(k):
        for j in range(k):
            sl = jax.lax.slice(
                x,
                (0, i, j, 0),
                (n, i + (ho - 1) * stride + 1, j + (wo - 1) * stride + 1, c),
                (1, stride, stride, 1),
            )
            flat = sl.reshape(-1)
            if tpad != total:
                flat = jnp.pad(flat, (0, tpad - total))
            taps.append(flat.reshape(tpad // LANE, LANE))

    out = pl.pallas_call(
        _max_taps_kernel,
        out_shape=jax.ShapeDtypeStruct((tpad // LANE, LANE), x.dtype),
        in_specs=[VMEM_SPEC] * (k * k),
        out_specs=VMEM_SPEC,
        compiler_params=NOGRID_PARAMS,
    )(*taps)
    return out.reshape(-1)[:total].reshape(n, ho, wo, c)


# ---------------------------------------------------------------------------
# Residual block: conv1(+relu) -> conv2 with fused (shortcut add + relu)
# ---------------------------------------------------------------------------
def res_block(x, p):
    stride = p["stride"]
    out1, _ = _conv_gemm(x, p["conv1"], stride, relu=True)

    coutp = p["conv2"]["wp"].shape[1]
    if stride != 1:
        # 1x1 projection shortcut (BN folded, no activation) — reuse its padded
        # flat output directly as the fused-add operand.
        _, sc_flat = _conv_gemm(x, p["shortcut"], stride, relu=False)
    else:
        # Identity shortcut: flatten and zero-pad channels to Coutp.
        x_flat = x.reshape(-1, x.shape[-1]).astype(jnp.float32)
        sc_flat = jnp.pad(x_flat, ((0, 0), (0, coutp - x.shape[-1])))

    out, _ = _conv_gemm(out1, p["conv2"], 1, relu=True, shortcut_flat=sc_flat)
    return out


# ---------------------------------------------------------------------------
# Fused global average pool + FC head
# ---------------------------------------------------------------------------
def head(x, fc_wp, fc_bp, n_classes):
    # TODO(synk): FC_Block definition not provided; assumed plain Linear.
    n, h, w, c = x.shape
    ncp = fc_wp.shape[1]
    out = pl.pallas_call(
        functools.partial(_avgpool_fc_kernel, inv_hw=1.0 / float(h * w)),
        out_shape=jax.ShapeDtypeStruct((n, ncp), jnp.float32),
        in_specs=[VMEM_SPEC] * 3,
        out_specs=VMEM_SPEC,
        compiler_params=NOGRID_PARAMS,
    )(x.reshape(n, h * w, c), fc_wp, fc_bp)
    return out[:, :n_classes]


# ---------------------------------------------------------------------------
# Parameter construction (deterministic, PyTorch-default-like init) with
# host-side BN/bias folding, weight repack, channel padding, bf16 cast.
# ---------------------------------------------------------------------------
def _init_conv(key, cin, cout, k):
    kw_, kb_ = jax.random.split(key)
    fan_in = cin * k * k
    bound = 1.0 / (fan_in ** 0.5)
    w = jax.random.uniform(kw_, (cout, cin, k, k), jnp.float32, -bound, bound)
    b = jax.random.uniform(kb_, (cout,), jnp.float32, -bound, bound)
    eps = 1e-5
    # BatchNorm2d folded in eval mode with default stats (gamma=1, beta=0,
    # running_mean=0, running_var=1) -> scale = 1/sqrt(1+eps), shift = 0.
    # For a trained model: scale = gamma/sqrt(var+eps), shift = beta - mean*scale.
    scale = jnp.full((cout,), 1.0 / (1.0 + eps) ** 0.5, jnp.float32)
    shift = jnp.zeros((cout,), jnp.float32)

    # Fold: y = (conv(x, w) + b) * scale + shift
    wf = w * scale[:, None, None, None]
    bf = b * scale + shift

    # Repack (cout, cin, kh, kw) -> (kh*kw*cin, cout), pad cout to 128 lanes.
    w2 = jnp.transpose(wf, (2, 3, 1, 0)).reshape(k * k * cin, cout)
    coutp = _round_up(cout, LANE)
    wp = jnp.pad(w2, ((0, 0), (0, coutp - cout))).astype(jnp.bfloat16)
    bp = jnp.pad(bf, (0, coutp - cout)).reshape(1, coutp).astype(jnp.float32)
    return {"wp": wp, "bp": bp, "cout": cout, "k": k}


def build_resnet_params(key, channel, n_classes, n_blocks, muls, strides, in_channel):
    keys = iter(jax.random.split(key, 64))
    params = {"stem": _init_conv(next(keys), in_channel, channel, 7)}
    in_ch = channel * muls[0]
    blocks = []
    for n_block, mul, stride in zip(n_blocks, muls, strides):
        for s in [stride] + [1] * (n_block - 1):
            ch = channel * mul
            blk = {
                "stride": s,
                "conv1": _init_conv(next(keys), in_ch, ch, 3),
                "conv2": _init_conv(next(keys), ch, ch, 3),
            }
            if s != 1:
                blk["shortcut"] = _init_conv(next(keys), in_ch, ch, 1)
            blocks.append(blk)
            in_ch = ch
    params["blocks"] = blocks

    bound = 1.0 / (in_ch ** 0.5)
    kfw, kfb = jax.random.split(next(keys))
    fc_w = jax.random.uniform(kfw, (in_ch, n_classes), jnp.float32, -bound, bound)
    fc_b = jax.random.uniform(kfb, (n_classes,), jnp.float32, -bound, bound)
    ncp = _round_up(n_classes, LANE)
    params["fc_wp"] = jnp.pad(fc_w, ((0, 0), (0, ncp - n_classes)))
    params["fc_bp"] = jnp.pad(fc_b, (0, ncp - n_classes)).reshape(1, ncp)
    params["n_classes"] = n_classes
    return params


# ---------------------------------------------------------------------------
# Full forward pass (mirrors ResNet.forward / the nn.Sequential stack)
# ---------------------------------------------------------------------------
def resnet_forward(x, params):
    out = conv_block(x, params["stem"], stride=2, relu=True)   # 7x7/2 conv+BN+ReLU
    out = maxpool2d(out, 3, 2)                                 # MaxPool2d((3,3), 2)
    for blk in params["blocks"]:
        out = res_block(out, blk)
    return head(out, params["fc_wp"], params["fc_bp"], params["n_classes"])


if __name__ == "__main__":
    key = jax.random.PRNGKey(0)
    k_x, k_p = jax.random.split(key)

    # ResNet(channel=8, n_classes=10, n_blocks=(1,1), muls=(1,2),
    #        strides=(1,2), in_channel=3, activation='relu')
    params = build_resnet_params(
        k_p, channel=8, n_classes=10,
        n_blocks=(1, 1), muls=(1, 2), strides=(1, 2), in_channel=3,
    )

    x = jax.random.normal(k_x, (2, 32, 32, 3), jnp.float32)  # NHWC input
    out = resnet_forward(x, params)
    jax.block_until_ready(out)
    assert out.shape == (2, 10), out.shape
    print("KERNEL_OK")
</pallas_src>

<mosaic_0001>
module attributes {stable_mosaic.version = 11 : i64} {
  func.func @_conv_gemm_kernel(%arg0: i32, %arg1: memref<512x147xbf16, #tpu.memory_space<vmem>>, %arg2: memref<147x128xbf16, #tpu.memory_space<vmem>>, %arg3: memref<1x128xf32, #tpu.memory_space<vmem>>, %arg4: memref<512x128xf32, #tpu.memory_space<vmem>>) attributes {dimension_semantics = [#tpu.dimension_semantics<parallel>], iteration_bounds = array<i64: 1>, scalar_prefetch = 0 : i64, scratch_operands = 0 : i64, tpu.core_type = #tpu.core_type<tc>, window_params = [{transform_indices = @transform_0, window_bounds = array<i64: 512, 147>}, {pipeline_mode = #tpu.pipeline_mode<synchronous>, transform_indices = @transform_1, window_bounds = array<i64: 147, 128>}, {pipeline_mode = #tpu.pipeline_mode<synchronous>, transform_indices = @transform_2, window_bounds = array<i64: 1, 128>}, {transform_indices = @transform_3, window_bounds = array<i64: 512, 128>}]} {
    %c0 = arith.constant 0 : index
    %c0_0 = arith.constant 0 : index
    %0 = vector.load %arg1[%c0, %c0_0] : memref<512x147xbf16, #tpu.memory_space<vmem>>, vector<512x147xbf16>
    %c0_1 = arith.constant 0 : index
    %c0_2 = arith.constant 0 : index
    %1 = vector.load %arg2[%c0_1, %c0_2] : memref<147x128xbf16, #tpu.memory_space<vmem>>, vector<147x128xbf16>
    %cst = arith.constant dense<0.000000e+00> : vector<512x128xf32>
    %2 = tpu.matmul %0, %1, %cst {dimension_numbers = #tpu.dot_dimension_numbers<[1], [0], [0], [1], [0, 0, 1, 1], [], []>} : vector<512x147xbf16>, vector<147x128xbf16>, vector<512x128xf32> -> vector<512x128xf32>
    %c0_3 = arith.constant 0 : index
    %c0_4 = arith.constant 0 : index
    %3 = vector.load %arg3[%c0_3, %c0_4] : memref<1x128xf32, #tpu.memory_space<vmem>>, vector<1x128xf32>
    %4 = vector.broadcast %3 : vector<1x128xf32> to vector<512x128xf32>
    %5 = arith.addf %2, %4 : vector<512x128xf32>
    %cst_5 = arith.constant 0.000000e+00 : f32
    %6 = vector.broadcast %cst_5 : f32 to vector<512x128xf32>
    %7 = arith.maximumf %5, %6 : vector<512x128xf32>
    %c0_6 = arith.constant 0 : index
    %c0_7 = arith.constant 0 : index
    %8 = vector.load %arg4[%c0_6, %c0_7] : memref<512x128xf32, #tpu.memory_space<vmem>>, vector<512x128xf32>
    tpu.vector_store %arg4[%c0_6, %c0_7], %7 {strides = array<i32>} : memref<512x128xf32, #tpu.memory_space<vmem>>, vector<512x128xf32>,
    return
  }
  func.func @transform_0(%arg0: i32) -> (i32, i32) {
    %c0_i32 = arith.constant 0 : i32
    %c0_i32_0 = arith.constant 0 : i32
    return %arg0, %c0_i32 : i32, i32
  }
  func.func @transform_1(%arg0: i32) -> (i32, i32) {
    %c0_i32 = arith.constant 0 : i32
    %c0_i32_0 = arith.constant 0 : i32
    %c0_i32_1 = arith.constant 0 : i32
    return %c0_i32, %c0_i32_0 : i32, i32
  }
  func.func @transform_2(%arg0: i32) -> (i32, i32) {
    %c0_i32 = arith.constant 0 : i32
    %c0_i32_0 = arith.constant 0 : i32
    %c0_i32_1 = arith.constant 0 : i32
    return %c0_i32, %c0_i32_0 : i32, i32
  }
  func.func @transform_3(%arg0: i32) -> (i32, i32) {
    %c0_i32 = arith.constant 0 : i32
    %c0_i32_0 = arith.constant 0 : i32
    return %arg0, %c0_i32 : i32, i32
  }
}

</mosaic_0001>

<bundles_post_ra>
// kernel: tpu_custom_call.1
= control target key start
LH: loop header
LB: loop body
LE: loop exit
PB: predicated region body
PF: predicated region fallthrough
CT: control target
= control target key end

     0   :  { %v1248_v1 = vmov 0   ;;  %vm451_vm0 = vcmask 154624   ;;  %vm548_vm1 = vcmask 1040384   ;;  %vm549_vm2 = vcmask 1041408   ;;  %s1599_s0 = inlined_call_operand.vmem [shape: bf16[512,147], index: 0, kind: input, shape index: {}]   ;;  %s1600_s1 = inlined_call_operand.vmem [shape: bf16[147,128], index: 1, kind: input, shape index: {}]   ;;  %s1601_s2 = inlined_call_operand.vmem [shape: f32[1,128], index: 2, kind: input, shape index: {}]   ;;  %s1602_s3 = inlined_call_operand.hbm [shape: f32[512,128], index: 3, kind: output, shape index: {}]  }
   0x1   :  { %v1120_v0 = vld [vmem:[%s1600_s1 + $0x38] sm:$0xff]   ;;  %555 = vmatprep.subr.bf16.mxu0 %v1248_v1  ;;  %1095 = vmatprep.subr.bf16.mxu1 %v1248_v1  ;;  %v1121_v2 = vld [vmem:[%s1600_s1 + $0x30] sm:$0xff]   ;;  %v1122_v3 = vld [vmem:[%s1600_s1 + $0x28] sm:$0xff]   ;;  %v1249_v10 = vmov 65535  }
   0x2   :  { %556 = vmatpush1.bf16.msra.mxu0 %v1120_v0  ;;  %1105 = vmatpush1.bf16.msra.mxu1 %v1120_v0  ;;  %v1123_v4 = vld [vmem:[%s1600_s1 + $0x20] sm:$0xff]   ;;  %v1124_v7 = vld [vmem:[%s1600_s1 + $0x18] sm:$0xff]   ;;  %v1125_v8 = vld [vmem:[%s1600_s1 + $0x10] sm:$0xff]   ;;  %v550_v11 = vsel %vm548_vm1, 4294967295, %v1249_v10 }
   0x3   :  { %557 = vmatprep.subr.bf16.mxu0 %v1248_v1  ;;  %1096 = vmatprep.subr.bf16.mxu1 %v1248_v1  ;;  %v1132_v5 = vld [vmem:[%s1599_s0 + $0x4] ss:$8 sps:$4 sm:$0xff]   ;;  %v1128_v13 = vld [vmem:[%s1600_s1 + $0x48] ss:$0 sps:$4 sm:$0x33]   ;;  %v551_v14 = vsel %vm549_vm2, %v550_v11, 0 }
   0x4   :  { %1063 = vmatprep.mubr.msk.bf16.mxu0 %vm451_vm0, %v1132_v5  ;;  %v1135_v6 = vld [vmem:[%s1599_s0 + $0x104] ss:$8 sps:$4 sm:$0xff]   ;;  %v553_v15 = vand.u32 %v1128_v13, %v551_v14  ;;  %v1130_v17 = vld [vmem:[%s1599_s0] ss:$8 sps:$4 sm:$0xff]   ;;  %v1136_v19 = vld [vmem:[%s1599_s0 + $0x14] ss:$8 sps:$4 sm:$0xff]  }
   0x5   :  { %1079 = vmatprep.mubr.msk.bf16.mxu1 %vm451_vm0, %v1135_v6  ;;  %v1126_v9 = vld [vmem:[%s1600_s1 + $0x8] sm:$0xff]   ;;  %v1127_v12 = vld [vmem:[%s1600_s1] sm:$0xff]   ;;  %v1138_v20 = vld [vmem:[%s1599_s0 + $0x114] ss:$8 sps:$4 sm:$0xff]  }
   0x6   :  { %558 = vmatpush1.bf16.msra.mxu0 %v1121_v2  ;;  %1106 = vmatpush1.bf16.msra.mxu1 %v1121_v2  ;;  %v1129_v16 = vld [vmem:[%s1600_s1 + $0x40] sm:$0xff]   ;;  %v1140_v21 = vld [vmem:[%s1599_s0 + $0x10] ss:$8 sps:$4 sm:$0xff]  }
   0x7   :  { %559 = vmatprep.subr.bf16.mxu0 %v1248_v1  ;;  %1097 = vmatprep.subr.bf16.mxu1 %v1248_v1  ;;  %v1133_v18 = vld [vmem:[%s1599_s0 + $0x100] ss:$8 sps:$4 sm:$0xff]   ;;  %v1141_v22 = vld [vmem:[%s1599_s0 + $0x110] ss:$8 sps:$4 sm:$0xff]   ;;  %v1142_v23 = vld [vmem:[%s1599_s0 + $0x24] ss:$8 sps:$4 sm:$0xff]  }
   0x8   :  { %v1144_v24 = vld [vmem:[%s1599_s0 + $0x124] ss:$8 sps:$4 sm:$0xff]  }
   0xa   :  { %560 = vmatpush1.bf16.msra.mxu0 %v1122_v3  ;;  %1107 = vmatpush1.bf16.msra.mxu1 %v1122_v3 }
   0xb   :  { %561 = vmatprep.subr.bf16.mxu0 %v1248_v1  ;;  %1098 = vmatprep.subr.bf16.mxu1 %v1248_v1 }
   0xe   :  { %562 = vmatpush1.bf16.msra.mxu0 %v1123_v4  ;;  %1108 = vmatpush1.bf16.msra.mxu1 %v1123_v4 }
   0xf   :  { %563 = vmatprep.subr.bf16.mxu0 %v1248_v1  ;;  %1099 = vmatprep.subr.bf16.mxu1 %v1248_v1 }
  0x12   :  { %564 = vmatpush1.bf16.msra.mxu0 %v1124_v7  ;;  %1109 = vmatpush1.bf16.msra.mxu1 %v1124_v7 }
  0x13   :  { %565 = vmatprep.subr.bf16.mxu0 %v1248_v1  ;;  %1100 = vmatprep.subr.bf16.mxu1 %v1248_v1 }
  0x16   :  { %566 = vmatpush1.bf16.msra.mxu0 %v1125_v8  ;;  %1110 = vmatpush1.bf16.msra.mxu1 %v1125_v8 }
  0x17   :  { %567 = vmatprep.subr.bf16.mxu0 %v1248_v1  ;;  %1101 = vmatprep.subr.bf16.mxu1 %v1248_v1 }
  0x1a   :  { %568 = vmatpush1.bf16.msra.mxu0 %v1126_v9  ;;  %1111 = vmatpush1.bf16.msra.mxu1 %v1126_v9 }
  0x1b   :  { %569 = vmatprep.subr.bf16.mxu0 %v1248_v1  ;;  %1102 = vmatprep.subr.bf16.mxu1 %v1248_v1 }
  0x1e   :  { %570 = vmatpush1.bf16.msra.mxu0 %v1127_v12  ;;  %1112 = vmatpush1.bf16.msra.mxu1 %v1127_v12 }
  0x1f   :  { %583 = vmatprep.subr.bf16.mxu0 %v1248_v1  ;;  %1103 = vmatprep.subr.bf16.mxu1 %v1248_v1 }
  0x22   :  { %584 = vmatpush2.bf16.msra.mxu0 %v553_v15  ;;  %1113 = vmatpush2.bf16.msra.mxu1 %v553_v15 }
  0x23   :  { %585 = vmatprep.subr.bf16.mxu0 %v1248_v1  ;;  %1104 = vmatprep.subr.bf16.mxu1 %v1248_v1 }
  0x26   :  { %586 = vmatpush2.bf16.msra.mxu0 %v1129_v16  ;;  %1114 = vmatpush2.bf16.msra.mxu1 %v1129_v16 }
  0x29   :  { %588 = vmatmul.mubr.bf16.vlgmr.msra.gmra.mxu0 %v1130_v17  ;;  %716 = vmatmul.mubr.bf16.vlgmr.msra.gmra.mxu1 %v1133_v18 }
  0x2a   :  { %1064 = vmatprep.mubr.msk.bf16.mxu0 %vm451_vm0, %v1136_v19  ;;  %1080 = vmatprep.mubr.msk.bf16.mxu1 %vm451_vm0, %v1138_v20 }
  0x31   :  { %596 = vmatmul.mubr.bf16.gmra.mxu0 %v1140_v21  ;;  %724 = vmatmul.mubr.bf16.gmra.mxu1 %v1141_v22 }
  0x32   :  { %1065 = vmatprep.mubr.msk.bf16.mxu0 %vm451_vm0, %v1142_v23  ;;  %1081 = vmatprep.mubr.msk.bf16.mxu1 %vm451_vm0, %v1144_v24 }
  0x33   :  { %8 = vsyncpa [#allocation3], 0  ;;  %v1146_v25 = vld [vmem:[%s1599_s0 + $0x20] ss:$8 sps:$4 sm:$0xff]   ;;  %v1148_v27 = vld [vmem:[%s1599_s0 + $0x34] ss:$8 sps:$4 sm:$0xff]  }
  0x34   :  { %v1147_v26 = vld [vmem:[%s1599_s0 + $0x120] ss:$8 sps:$4 sm:$0xff]   ;;  %v1150_v28 = vld [vmem:[%s1599_s0 + $0x134] ss:$8 sps:$4 sm:$0xff]   ;;  %v1152_v29 = vld [vmem:[%s1599_s0 + $0x30] ss:$8 sps:$4 sm:$0xff]  }
  0x35   :  { %v1153_v30 = vld [vmem:[%s1599_s0 + $0x130] ss:$8 sps:$4 sm:$0xff]   ;;  %v1154_v31 = vld [vmem:[%s1599_s0 + $0x44] ss:$8 sps:$4 sm:$0xff]   ;;  %v1158_v33 = vld [vmem:[%s1599_s0 + $0x40] ss:$8 sps:$4 sm:$0xff]  }
  0x36   :  { %v1156_v32 = vld [vmem:[%s1599_s0 + $0x144] ss:$8 sps:$4 sm:$0xff]   ;;  %v1159_v34 = vld [vmem:[%s1599_s0 + $0x140] ss:$8 sps:$4 sm:$0xff]   ;;  %v1160_v35 = vld [vmem:[%s1599_s0 + $0x54] ss:$8 sps:$4 sm:$0xff]  }
  0x37   :  { %v1162_v36 = vld [vmem:[%s1599_s0 + $0x154] ss:$8 sps:$4 sm:$0xff]   ;;  %v1164_v37 = vld [vmem:[%s1599_s0 + $0x50] ss:$8 sps:$4 sm:$0xff]   ;;  %v1166_v39 = vld [vmem:[%s1599_s0 + $0x64] ss:$8 sps:$4 sm:$0xff]  }
  0x38   :  { %v1165_v38 = vld [vmem:[%s1599_s0 + $0x150] ss:$8 sps:$4 sm:$0xff]   ;;  %v1168_v40 = vld [vmem:[%s1599_s0 + $0x164] ss:$8 sps:$4 sm:$0xff]   ;;  %v1170_v41 = vld [vmem:[%s1599_s0 + $0x60] ss:$8 sps:$4 sm:$0xff]  }
  0x39   :  { %604 = vmatmul.mubr.bf16.gmra.mxu0 %v1146_v25  ;;  %732 = vmatmul.mubr.bf16.gmra.mxu1 %v1147_v26  ;;  %v1171_v42 = vld [vmem:[%s1599_s0 + $0x160] ss:$8 sps:$4 sm:$0xff]   ;;  %v1172_v43 = vld [vmem:[%s1599_s0 + $0x74] ss:$8 sps:$4 sm:$0xff]   ;;  %v1176_v45 = vld [vmem:[%s1599_s0 + $0x70] ss:$8 sps:$4 sm:$0xff]  }
  0x3a   :  { %1066 = vmatprep.mubr.msk.bf16.mxu0 %vm451_vm0, %v1148_v27  ;;  %1082 = vmatprep.mubr.msk.bf16.mxu1 %vm451_vm0, %v1150_v28  ;;  %v1174_v44 = vld [vmem:[%s1599_s0 + $0x174] ss:$8 sps:$4 sm:$0xff]   ;;  %v1177_v46 = vld [vmem:[%s1599_s0 + $0x170] ss:$8 sps:$4 sm:$0xff]   ;;  %v1178_v47 = vld [vmem:[%s1599_s0 + $0x84] ss:$8 sps:$4 sm:$0xff]  }
  0x3b   :  { %v1180_v48 = vld [vmem:[%s1599_s0 + $0x184] ss:$8 sps:$4 sm:$0xff]   ;;  %v1182_v49 = vld [vmem:[%s1599_s0 + $0x80] ss:$8 sps:$4 sm:$0xff]   ;;  %v1184_v51 = vld [vmem:[%s1599_s0 + $0x94] ss:$8 sps:$4 sm:$0xff]  }
  0x3c   :  { %v1183_v50 = vld [vmem:[%s1599_s0 + $0x180] ss:$8 sps:$4 sm:$0xff]   ;;  %v1186_v52 = vld [vmem:[%s1599_s0 + $0x194] ss:$8 sps:$4 sm:$0xff]   ;;  %v1188_v53 = vld [vmem:[%s1599_s0 + $0x90] ss:$8 sps:$4 sm:$0xff]  }
  0x3d   :  { %v1189_v54 = vld [vmem:[%s1599_s0 + $0x190] ss:$8 sps:$4 sm:$0xff]   ;;  %v1190_v55 = vld [vmem:[%s1599_s0 + $0xa4] ss:$8 sps:$4 sm:$0xff]   ;;  %v1194_v57 = vld [vmem:[%s1599_s0 + $0xa0] ss:$8 sps:$4 sm:$0xff]  }
  0x3e   :  { %v1192_v56 = vld [vmem:[%s1599_s0 + $0x1a4] ss:$8 sps:$4 sm:$0xff]   ;;  %v1195_v58 = vld [vmem:[%s1599_s0 + $0x1a0] ss:$8 sps:$4 sm:$0xff]   ;;  %v1196_v59 = vld [vmem:[%s1599_s0 + $0xb4] ss:$8 sps:$4 sm:$0xff]  }
  0x3f   :  { %v1198_v60 = vld [vmem:[%s1599_s0 + $0x1b4] ss:$8 sps:$4 sm:$0xff]   ;;  %v1200_v61 = vld [vmem:[%s1599_s0 + $0xb0] ss:$8 sps:$4 sm:$0xff]   ;;  %v1202_v63 = vld [vmem:[%s1599_s0 + $0xc4] ss:$8 sps:$4 sm:$0xff]  }
  0x40   :  { %v1201_v62 = vld [vmem:[%s1599_s0 + $0x1b0] ss:$8 sps:$4 sm:$0xff]   ;;  %v1204_v0 = vld [vmem:[%s1599_s0 + $0x1c4] ss:$8 sps:$4 sm:$0xff]   ;;  %v1206_v1 = vld [vmem:[%s1599_s0 + $0xc0] ss:$8 sps:$4 sm:$0xff]  }
  0x41   :  { %612 = vmatmul.mubr.bf16.gmra.mxu0 %v1152_v29  ;;  %740 = vmatmul.mubr.bf16.gmra.mxu1 %v1153_v30  ;;  %v1207_v2 = vld [vmem:[%s1599_s0 + $0x1c0] ss:$8 sps:$4 sm:$0xff]   ;;  %v1208_v3 = vld [vmem:[%s1599_s0 + $0xd4] ss:$8 sps:$4 sm:$0xff]   ;;  %v1212_v5 = vld [vmem:[%s1599_s0 + $0xd0] ss:$8 sps:$4 sm:$0xff]  }
  0x42   :  { %1067 = vmatprep.mubr.msk.bf16.mxu0 %vm451_vm0, %v1154_v31  ;;  %1083 = vmatprep.mubr.msk.bf16.mxu1 %vm451_vm0, %v1156_v32  ;;  %v1210_v4 = vld [vmem:[%s1599_s0 + $0x1d4] ss:$8 sps:$4 sm:$0xff]   ;;  %v1213_v6 = vld [vmem:[%s1599_s0 + $0x1d0] ss:$8 sps:$4 sm:$0xff]   ;;  %v1214_v7 = vld [vmem:[%s1599_s0 + $0xe4] ss:$8 sps:$4 sm:$0xff]  }
  0x43   :  { %v1216_v8 = vld [vmem:[%s1599_s0 + $0x1e4] ss:$8 sps:$4 sm:$0xff]   ;;  %v1218_v9 = vld [vmem:[%s1599_s0 + $0xe0] ss:$8 sps:$4 sm:$0xff]   ;;  %v1220_v11 = vld [vmem:[%s1599_s0 + $0xf4] ss:$8 sps:$4 sm:$0xff]  }
  0x44   :  { %v1219_v10 = vld [vmem:[%s1599_s0 + $0x1e0] ss:$8 sps:$4 sm:$0xff]   ;;  %v1222_v12 = vld [vmem:[%s1599_s0 + $0x1f4] ss:$8 sps:$4 sm:$0xff]   ;;  %v1224_v13 = vld [vmem:[%s1599_s0 + $0xf0] ss:$8 sps:$4 sm:$0xff]  }
  0x45   :  { %v1225_v14 = vld [vmem:[%s1599_s0 + $0x1f0] ss:$8 sps:$4 sm:$0xff]   ;;  %v1530_v15 = vld [vmem:[%s1601_s2] ss:$0 sm:$0xff]  ;;  %s1250_s0 = smov [#allocation2]  }
  0x46   :  { %s977_s2 = sshll.u32 %s1250_s0, 4  ;;  %s978_s2 = int_to_ptr.vmem [resolvable:$true] %s977_s2 }
  0x47   :  { %s1226_s22 = scalar_lea.vmem %s978_s2, 8192  ;;  %p1231_p1 = scmp.lt.s32.totalorder %s978_s2, %s978_s2 }
  0x48   :  { %p1227_p0 = scmp.ne.s32.totalorder %s978_s2, %s1226_s22  ;;  %p1232_p2 = scmp.lt.s32.totalorder %s1226_s22, %s1226_s22 }
  0x49   :  { %620 = vmatmul.mubr.bf16.gmra.mxu0 %v1158_v33  ;;  %748 = vmatmul.mubr.bf16.gmra.mxu1 %v1159_v34 }
  0x4a   :  { %1068 = vmatprep.mubr.msk.bf16.mxu0 %vm451_vm0, %v1160_v35  ;;  %1084 = vmatprep.mubr.msk.bf16.mxu1 %vm451_vm0, %v1162_v36  ;;  %p1233_p3 = por %p1232_p2, %p1231_p1 }
  0x4c   :  { %p1234_p4 = pnand %p1233_p3, %p1227_p0 }
  0x51   :  { %628 = vmatmul.mubr.bf16.gmra.mxu0 %v1164_v37  ;;  %756 = vmatmul.mubr.bf16.gmra.mxu1 %v1165_v38 }
  0x52   :  { %1069 = vmatprep.mubr.msk.bf16.mxu0 %vm451_vm0, %v1166_v39  ;;  %1085 = vmatprep.mubr.msk.bf16.mxu1 %vm451_vm0, %v1168_v40 }
  0x59   :  { %636 = vmatmul.mubr.bf16.gmra.mxu0 %v1170_v41  ;;  %764 = vmatmul.mubr.bf16.gmra.mxu1 %v1171_v42 }
  0x5a   :  { %1070 = vmatprep.mubr.msk.bf16.mxu0 %vm451_vm0, %v1172_v43  ;;  %1086 = vmatprep.mubr.msk.bf16.mxu1 %vm451_vm0, %v1174_v44 }
  0x61   :  { %644 = vmatmul.mubr.bf16.gmra.mxu0 %v1176_v45  ;;  %772 = vmatmul.mubr.bf16.gmra.mxu1 %v1177_v46 }
  0x62   :  { %1071 = vmatprep.mubr.msk.bf16.mxu0 %vm451_vm0, %v1178_v47  ;;  %1087 = vmatprep.mubr.msk.bf16.mxu1 %vm451_vm0, %v1180_v48 }
  0x69   :  { %652 = vmatmul.mubr.bf16.gmra.mxu0 %v1182_v49  ;;  %780 = vmatmul.mubr.bf16.gmra.mxu1 %v1183_v50 }
  0x6a   :  { %1072 = vmatprep.mubr.msk.bf16.mxu0 %vm451_vm0, %v1184_v51  ;;  %1088 = vmatprep.mubr.msk.bf16.mxu1 %vm451_vm0, %v1186_v52 }
  0x71   :  { %660 = vmatmul.mubr.bf16.gmra.mxu0 %v1188_v53  ;;  %788 = vmatmul.mubr.bf16.gmra.mxu1 %v1189_v54 }
  0x72   :  { %1073 = vmatprep.mubr.msk.bf16.mxu0 %vm451_vm0, %v1190_v55  ;;  %1089 = vmatprep.mubr.msk.bf16.mxu1 %vm451_vm0, %v1192_v56 }
  0x79   :  { %668 = vmatmul.mubr.bf16.gmra.mxu0 %v1194_v57  ;;  %796 = vmatmul.mubr.bf16.gmra.mxu1 %v1195_v58 }
  0x7a   :  { %1074 = vmatprep.mubr.msk.bf16.mxu0 %vm451_vm0, %v1196_v59  ;;  %1090 = vmatprep.mubr.msk.bf16.mxu1 %vm451_vm0, %v1198_v60 }
  0x81   :  { %676 = vmatmul.mubr.bf16.gmra.mxu0 %v1200_v61  ;;  %804 = vmatmul.mubr.bf16.gmra.mxu1 %v1201_v62 }
  0x82   :  { %1075 = vmatprep.mubr.msk.bf16.mxu0 %vm451_vm0, %v1202_v63  ;;  %1091 = vmatprep.mubr.msk.bf16.mxu1 %vm451_vm0, %v1204_v0 }
  0x89   :  { %684 = vmatmul.mubr.bf16.gmra.mxu0 %v1206_v1  ;;  %812 = vmatmul.mubr.bf16.gmra.mxu1 %v1207_v2 }
  0x8a   :  { %1076 = vmatprep.mubr.msk.bf16.mxu0 %vm451_vm0, %v1208_v3  ;;  %1092 = vmatprep.mubr.msk.bf16.mxu1 %vm451_vm0, %v1210_v4 }
  0x91   :  { %692 = vmatmul.mubr.bf16.gmra.mxu0 %v1212_v5  ;;  %820 = vmatmul.mubr.bf16.gmra.mxu1 %v1213_v6 }
  0x92   :  { %1077 = vmatprep.mubr.msk.bf16.mxu0 %vm451_vm0, %v1214_v7  ;;  %1093 = vmatprep.mubr.msk.bf16.mxu1 %vm451_vm0, %v1216_v8 }
  0x99   :  { %700 = vmatmul.mubr.bf16.gmra.mxu0 %v1218_v9  ;;  %828 = vmatmul.mubr.bf16.gmra.mxu1 %v1219_v10 }
  0x9a   :  { %1078 = vmatprep.mubr.msk.bf16.mxu0 %vm451_vm0, %v1220_v11  ;;  %1094 = vmatprep.mubr.msk.bf16.mxu1 %vm451_vm0, %v1222_v12 }
  0xa1   :  { %708 = vmatmul.mubr.bf16.gmra.mxu0 %v1224_v13  ;;  %836 = vmatmul.mubr.bf16.gmra.mxu1 %v1225_v14 }
  0xe9   :  { %v589_v16 = vpop.f32.mrf.mxu0  ;;  %v717_v17 = vpop.f32.mrf.mxu1 }
  0xea   :  { %v590_v18 = vadd.f32 %v1530_v15, %v589_v16  ;;  %v718_v19 = vadd.f32 %v1530_v15, %v717_v17 }
  0xeb   :  { %v591_v20 = vpop.f32.mrf.mxu0  ;;  %v719_v21 = vpop.f32.mrf.mxu1 }
  0xec   :  { %v844_v22 = vmax.f32 %v590_v18, 0.0  ;;  %v876_v23 = vmax.f32 %v718_v19, 0.0 }
  0xed   :  { %v592_v24 = vpop.f32.mrf.mxu0  ;;  %v720_v25 = vpop.f32.mrf.mxu1 }
  0xee   :  { %908 = vst [vmem:[#allocation2] sm:$0xff] %v844_v22  ;;  %940 = vst [vmem:[#allocation2 + $0x100] sm:$0xff] %v876_v23  ;;  %v593_v26 = vadd.f32 %v1530_v15, %v592_v24  ;;  %v721_v27 = vadd.f32 %v1530_v15, %v720_v25 }
  0xef   :  { %v594_v28 = vpop.f32.mrf.mxu0  ;;  %v722_v29 = vpop.f32.mrf.mxu1 }
  0xf0   :  { %v845_v30 = vmax.f32 %v593_v26, 0.0  ;;  %v877_v31 = vmax.f32 %v721_v27, 0.0 }
  0xf1   :  { %v597_v32 = vpop.f32.mrf.mxu0  ;;  %v725_v33 = vpop.f32.mrf.mxu1 }
  0xf2   :  { %909 = vst [vmem:[#allocation2 + $0x8] sm:$0xff] %v845_v30  ;;  %941 = vst [vmem:[#allocation2 + $0x108] sm:$0xff] %v877_v31  ;;  %v598_v34 = vadd.f32 %v1530_v15, %v597_v32  ;;  %v726_v35 = vadd.f32 %v1530_v15, %v725_v33 }
  0xf3   :  { %v599_v36 = vpop.f32.mrf.mxu0  ;;  %v727_v37 = vpop.f32.mrf.mxu1 }
  0xf4   :  { %v846_v38 = vmax.f32 %v598_v34, 0.0  ;;  %v878_v39 = vmax.f32 %v726_v35, 0.0 }
  0xf5   :  { %v600_v40 = vpop.f32.mrf.mxu0  ;;  %v728_v41 = vpop.f32.mrf.mxu1 }
  0xf6   :  { %910 = vst [vmem:[#allocation2 + $0x10] sm:$0xff] %v846_v38  ;;  %942 = vst [vmem:[#allocation2 + $0x110] sm:$0xff] %v878_v39  ;;  %v601_v42 = vadd.f32 %v1530_v15, %v600_v40  ;;  %v729_v43 = vadd.f32 %v1530_v15, %v728_v41 }
  0xf7   :  { %v602_v44 = vpop.f32.mrf.mxu0  ;;  %v730_v45 = vpop.f32.mrf.mxu1 }
  0xf8   :  { %v847_v46 = vmax.f32 %v601_v42, 0.0  ;;  %v879_v47 = vmax.f32 %v729_v43, 0.0 }
  0xf9   :  { %v605_v48 = vpop.f32.mrf.mxu0  ;;  %v733_v49 = vpop.f32.mrf.mxu1 }
  0xfa   :  { %911 = vst [vmem:[#allocation2 + $0x18] sm:$0xff] %v847_v46  ;;  %943 = vst [vmem:[#allocation2 + $0x118] sm:$0xff] %v879_v47  ;;  %v606_v50 = vadd.f32 %v1530_v15, %v605_v48  ;;  %v734_v51 = vadd.f32 %v1530_v15, %v733_v49 }
  0xfb   :  { %v607_v52 = vpop.f32.mrf.mxu0  ;;  %v735_v53 = vpop.f32.mrf.mxu1 }
  0xfc   :  { %v848_v54 = vmax.f32 %v606_v50, 0.0  ;;  %v880_v55 = vmax.f32 %v734_v51, 0.0 }
  0xfd   :  { %v608_v56 = vpop.f32.mrf.mxu0  ;;  %v736_v57 = vpop.f32.mrf.mxu1 }
  0xfe   :  { %912 = vst [vmem:[#allocation2 + $0x20] sm:$0xff] %v848_v54  ;;  %944 = vst [vmem:[#allocation2 + $0x120] sm:$0xff] %v880_v55  ;;  %v609_v58 = vadd.f32 %v1530_v15, %v608_v56  ;;  %v737_v59 = vadd.f32 %v1530_v15, %v736_v57 }
  0xff   :  { %v610_v60 = vpop.f32.mrf.mxu0  ;;  %v738_v61 = vpop.f32.mrf.mxu1 }
 0x100   :  { %v849_v62 = vmax.f32 %v609_v58, 0.0  ;;  %v881_v63 = vmax.f32 %v737_v59, 0.0 }
 0x101   :  { %v613_v0 = vpop.f32.mrf.mxu0  ;;  %v741_v1 = vpop.f32.mrf.mxu1 }
 0x102   :  { %913 = vst [vmem:[#allocation2 + $0x28] sm:$0xff] %v849_v62  ;;  %945 = vst [vmem:[#allocation2 + $0x128] sm:$0xff] %v881_v63  ;;  %v614_v2 = vadd.f32 %v1530_v15, %v613_v0  ;;  %v742_v3 = vadd.f32 %v1530_v15, %v741_v1 }
 0x103   :  { %v615_v4 = vpop.f32.mrf.mxu0  ;;  %v743_v5 = vpop.f32.mrf.mxu1 }
 0x104   :  { %v850_v6 = vmax.f32 %v614_v2, 0.0  ;;  %v882_v7 = vmax.f32 %v742_v3, 0.0 }
 0x105   :  { %v616_v8 = vpop.f32.mrf.mxu0  ;;  %v744_v9 = vpop.f32.mrf.mxu1 }
 0x106   :  { %914 = vst [vmem:[#allocation2 + $0x30] sm:$0xff] %v850_v6  ;;  %946 = vst [vmem:[#allocation2 + $0x130] sm:$0xff] %v882_v7  ;;  %v617_v10 = vadd.f32 %v1530_v15, %v616_v8  ;;  %v745_v11 = vadd.f32 %v1530_v15, %v744_v9 }
 0x107   :  { %v618_v12 = vpop.f32.mrf.mxu0  ;;  %v746_v13 = vpop.f32.mrf.mxu1 }
 0x108   :  { %v851_v14 = vmax.f32 %v617_v10, 0.0  ;;  %v883_v16 = vmax.f32 %v745_v11, 0.0 }
 0x109   :  { %v621_v17 = vpop.f32.mrf.mxu0  ;;  %v749_v18 = vpop.f32.mrf.mxu1 }
 0x10a   :  { %915 = vst [vmem:[#allocation2 + $0x38] sm:$0xff] %v851_v14  ;;  %947 = vst [vmem:[#allocation2 + $0x138] sm:$0xff] %v883_v16  ;;  %v622_v19 = vadd.f32 %v1530_v15, %v621_v17  ;;  %v750_v20 = vadd.f32 %v1530_v15, %v749_v18 }
 0x10b   :  { %v623_v21 = vpop.f32.mrf.mxu0  ;;  %v751_v22 = vpop.f32.mrf.mxu1 }
 0x10c   :  { %v852_v23 = vmax.f32 %v622_v19, 0.0  ;;  %v884_v24 = vmax.f32 %v750_v20, 0.0 }
 0x10d   :  { %v624_v25 = vpop.f32.mrf.mxu0  ;;  %v752_v26 = vpop.f32.mrf.mxu1 }
 0x10e   :  { %916 = vst [vmem:[#allocation2 + $0x40] sm:$0xff] %v852_v23  ;;  %948 = vst [vmem:[#allocation2 + $0x140] sm:$0xff] %v884_v24  ;;  %v625_v27 = vadd.f32 %v1530_v15, %v624_v25  ;;  %v753_v28 = vadd.f32 %v1530_v15, %v752_v26 }
 0x10f   :  { %v626_v29 = vpop.f32.mrf.mxu0  ;;  %v754_v30 = vpop.f32.mrf.mxu1 }
 0x110   :  { %v853_v31 = vmax.f32 %v625_v27, 0.0  ;;  %v885_v32 = vmax.f32 %v753_v28, 0.0 }
 0x111   :  { %v629_v33 = vpop.f32.mrf.mxu0  ;;  %v757_v34 = vpop.f32.mrf.mxu1 }
 0x112   :  { %917 = vst [vmem:[#allocation2 + $0x48] sm:$0xff] %v853_v31  ;;  %949 = vst [vmem:[#allocation2 + $0x148] sm:$0xff] %v885_v32  ;;  %v630_v35 = vadd.f32 %v1530_v15, %v629_v33  ;;  %v758_v36 = vadd.f32 %v1530_v15, %v757_v34 }
 0x113   :  { %v631_v37 = vpop.f32.mrf.mxu0  ;;  %v759_v38 = vpop.f32.mrf.mxu1 }
 0x114   :  { %v854_v39 = vmax.f32 %v630_v35, 0.0  ;;  %v886_v40 = vmax.f32 %v758_v36, 0.0 }
 0x115   :  { %v632_v41 = vpop.f32.mrf.mxu0  ;;  %v760_v42 = vpop.f32.mrf.mxu1 }
 0x116   :  { %918 = vst [vmem:[#allocation2 + $0x50] sm:$0xff] %v854_v39  ;;  %950 = vst [vmem:[#allocation2 + $0x150] sm:$0xff] %v886_v40  ;;  %v633_v43 = vadd.f32 %v1530_v15, %v632_v41  ;;  %v761_v44 = vadd.f32 %v1530_v15, %v760_v42 }
 0x117   :  { %v634_v45 = vpop.f32.mrf.mxu0  ;;  %v762_v46 = vpop.f32.mrf.mxu1 }
 0x118   :  { %v855_v47 = vmax.f32 %v633_v43, 0.0  ;;  %v887_v48 = vmax.f32 %v761_v44, 0.0 }
 0x119   :  { %v637_v49 = vpop.f32.mrf.mxu0  ;;  %v765_v50 = vpop.f32.mrf.mxu1 }
 0x11a   :  { %919 = vst [vmem:[#allocation2 + $0x58] sm:$0xff] %v855_v47  ;;  %951 = vst [vmem:[#allocation2 + $0x158] sm:$0xff] %v887_v48  ;;  %v638_v51 = vadd.f32 %v1530_v15, %v637_v49  ;;  %v766_v52 = vadd.f32 %v1530_v15, %v765_v50 }
 0x11b   :  { %v639_v53 = vpop.f32.mrf.mxu0  ;;  %v767_v54 = vpop.f32.mrf.mxu1 }
 0x11c   :  { %v856_v55 = vmax.f32 %v638_v51, 0.0  ;;  %v888_v56 = vmax.f32 %v766_v52, 0.0 }
 0x11d   :  { %v640_v57 = vpop.f32.mrf.mxu0  ;;  %v768_v58 = vpop.f32.mrf.mxu1 }
 0x11e   :  { %920 = vst [vmem:[#allocation2 + $0x60] sm:$0xff] %v856_v55  ;;  %952 = vst [vmem:[#allocation2 + $0x160] sm:$0xff] %v888_v56  ;;  %v641_v59 = vadd.f32 %v1530_v15, %v640_v57  ;;  %v769_v60 = vadd.f32 %v1530_v15, %v768_v58 }
 0x11f   :  { %v642_v61 = vpop.f32.mrf.mxu0  ;;  %v770_v62 = vpop.f32.mrf.mxu1 }
 0x120   :  { %v857_v63 = vmax.f32 %v641_v59, 0.0  ;;  %v889_v0 = vmax.f32 %v769_v60, 0.0 }
 0x121   :  { %v645_v1 = vpop.f32.mrf.mxu0  ;;  %v773_v2 = vpop.f32.mrf.mxu1 }
 0x122   :  { %921 = vst [vmem:[#allocation2 + $0x68] sm:$0xff] %v857_v63  ;;  %953 = vst [vmem:[#allocation2 + $0x168] sm:$0xff] %v889_v0  ;;  %v646_v3 = vadd.f32 %v1530_v15, %v645_v1  ;;  %v774_v4 = vadd.f32 %v1530_v15, %v773_v2 }
 0x123   :  { %v647_v5 = vpop.f32.mrf.mxu0  ;;  %v775_v6 = vpop.f32.mrf.mxu1 }
 0x124   :  { %v858_v7 = vmax.f32 %v646_v3, 0.0  ;;  %v890_v8 = vmax.f32 %v774_v4, 0.0 }
 0x125   :  { %v648_v9 = vpop.f32.mrf.mxu0  ;;  %v776_v10 = vpop.f32.mrf.mxu1 }
 0x126   :  { %922 = vst [vmem:[#allocation2 + $0x70] sm:$0xff] %v858_v7  ;;  %954 = vst [vmem:[#allocation2 + $0x170] sm:$0xff] %v890_v8  ;;  %v649_v11 = vadd.f32 %v1530_v15, %v648_v9  ;;  %v777_v12 = vadd.f32 %v1530_v15, %v776_v10 }
 0x127   :  { %v650_v13 = vpop.f32.mrf.mxu0  ;;  %v778_v14 = vpop.f32.mrf.mxu1 }
 0x128   :  { %v859_v16 = vmax.f32 %v649_v11, 0.0  ;;  %v891_v17 = vmax.f32 %v777_v12, 0.0 }
 0x129   :  { %v653_v18 = vpop.f32.mrf.mxu0  ;;  %v781_v19 = vpop.f32.mrf.mxu1 }
 0x12a   :  { %923 = vst [vmem:[#allocation2 + $0x78] sm:$0xff] %v859_v16  ;;  %955 = vst [vmem:[#allocation2 + $0x178] sm:$0xff] %v891_v17  ;;  %v654_v20 = vadd.f32 %v1530_v15, %v653_v18  ;;  %v782_v21 = vadd.f32 %v1530_v15, %v781_v19 }
 0x12b   :  { %v655_v22 = vpop.f32.mrf.mxu0  ;;  %v783_v23 = vpop.f32.mrf.mxu1 }
 0x12c   :  { %v860_v24 = vmax.f32 %v654_v20, 0.0  ;;  %v892_v25 = vmax.f32 %v782_v21, 0.0 }
 0x12d   :  { %v656_v26 = vpop.f32.mrf.mxu0  ;;  %v784_v27 = vpop.f32.mrf.mxu1 }
 0x12e   :  { %924 = vst [vmem:[#allocation2 + $0x80] sm:$0xff] %v860_v24  ;;  %956 = vst [vmem:[#allocation2 + $0x180] sm:$0xff] %v892_v25  ;;  %v657_v28 = vadd.f32 %v1530_v15, %v656_v26  ;;  %v785_v29 = vadd.f32 %v1530_v15, %v784_v27 }
 0x12f   :  { %v658_v30 = vpop.f32.mrf.mxu0  ;;  %v786_v31 = vpop.f32.mrf.mxu1 }
 0x130   :  { %v861_v32 = vmax.f32 %v657_v28, 0.0  ;;  %v893_v33 = vmax.f32 %v785_v29, 0.0 }
 0x131   :  { %v661_v34 = vpop.f32.mrf.mxu0  ;;  %v789_v35 = vpop.f32.mrf.mxu1 }
 0x132   :  { %925 = vst [vmem:[#allocation2 + $0x88] sm:$0xff] %v861_v32  ;;  %957 = vst [vmem:[#allocation2 + $0x188] sm:$0xff] %v893_v33  ;;  %v662_v36 = vadd.f32 %v1530_v15, %v661_v34  ;;  %v790_v37 = vadd.f32 %v1530_v15, %v789_v35 }
 0x133   :  { %v663_v38 = vpop.f32.mrf.mxu0  ;;  %v791_v39 = vpop.f32.mrf.mxu1 }
 0x134   :  { %v862_v40 = vmax.f32 %v662_v36, 0.0  ;;  %v894_v41 = vmax.f32 %v790_v37, 0.0 }
 0x135   :  { %v664_v42 = vpop.f32.mrf.mxu0  ;;  %v792_v43 = vpop.f32.mrf.mxu1 }
 0x136   :  { %926 = vst [vmem:[#allocation2 + $0x90] sm:$0xff] %v862_v40  ;;  %958 = vst [vmem:[#allocation2 + $0x190] sm:$0xff] %v894_v41  ;;  %v665_v44 = vadd.f32 %v1530_v15, %v664_v42  ;;  %v793_v45 = vadd.f32 %v1530_v15, %v792_v43 }
 0x137   :  { %v666_v46 = vpop.f32.mrf.mxu0  ;;  %v794_v47 = vpop.f32.mrf.mxu1 }
 0x138   :  { %v863_v48 = vmax.f32 %v665_v44, 0.0  ;;  %v895_v49 = vmax.f32 %v793_v45, 0.0 }
 0x139   :  { %v669_v50 = vpop.f32.mrf.mxu0  ;;  %v797_v51 = vpop.f32.mrf.mxu1 }
 0x13a   :  { %927 = vst [vmem:[#allocation2 + $0x98] sm:$0xff] %v863_v48  ;;  %959 = vst [vmem:[#allocation2 + $0x198] sm:$0xff] %v895_v49  ;;  %v670_v52 = vadd.f32 %v1530_v15, %v669_v50  ;;  %v798_v53 = vadd.f32 %v1530_v15, %v797_v51 }
 0x13b   :  { %v671_v54 = vpop.f32.mrf.mxu0  ;;  %v799_v55 = vpop.f32.mrf.mxu1 }
 0x13c   :  { %v864_v56 = vmax.f32 %v670_v52, 0.0  ;;  %v896_v57 = vmax.f32 %v798_v53, 0.0 }
 0x13d   :  { %v672_v58 = vpop.f32.mrf.mxu0  ;;  %v800_v59 = vpop.f32.mrf.mxu1 }
 0x13e   :  { %928 = vst [vmem:[#allocation2 + $0xa0] sm:$0xff] %v864_v56  ;;  %960 = vst [vmem:[#allocation2 + $0x1a0] sm:$0xff] %v896_v57  ;;  %v673_v60 = vadd.f32 %v1530_v15, %v672_v58  ;;  %v801_v61 = vadd.f32 %v1530_v15, %v800_v59 }
 0x13f   :  { %v674_v62 = vpop.f32.mrf.mxu0  ;;  %v802_v63 = vpop.f32.mrf.mxu1 }
 0x140   :  { %v865_v0 = vmax.f32 %v673_v60, 0.0  ;;  %v897_v1 = vmax.f32 %v801_v61, 0.0 }
 0x141   :  { %v677_v2 = vpop.f32.mrf.mxu0  ;;  %v805_v3 = vpop.f32.mrf.mxu1 }
 0x142   :  { %929 = vst [vmem:[#allocation2 + $0xa8] sm:$0xff] %v865_v0  ;;  %961 = vst [vmem:[#allocation2 + $0x1a8] sm:$0xff] %v897_v1  ;;  %v678_v4 = vadd.f32 %v1530_v15, %v677_v2  ;;  %v806_v5 = vadd.f32 %v1530_v15, %v805_v3 }
 0x143   :  { %v679_v6 = vpop.f32.mrf.mxu0  ;;  %v807_v7 = vpop.f32.mrf.mxu1 }
 0x144   :  { %v866_v8 = vmax.f32 %v678_v4, 0.0  ;;  %v898_v9 = vmax.f32 %v806_v5, 0.0 }
 0x145   :  { %v680_v10 = vpop.f32.mrf.mxu0  ;;  %v808_v11 = vpop.f32.mrf.mxu1 }
 0x146   :  { %930 = vst [vmem:[#allocation2 + $0xb0] sm:$0xff] %v866_v8  ;;  %962 = vst [vmem:[#allocation2 + $0x1b0] sm:$0xff] %v898_v9  ;;  %v681_v12 = vadd.f32 %v1530_v15, %v680_v10  ;;  %v809_v13 = vadd.f32 %v1530_v15, %v808_v11 }
 0x147   :  { %v682_v14 = vpop.f32.mrf.mxu0  ;;  %v810_v16 = vpop.f32.mrf.mxu1 }
 0x148   :  { %v867_v17 = vmax.f32 %v681_v12, 0.0  ;;  %v899_v18 = vmax.f32 %v809_v13, 0.0 }
 0x149   :  { %v685_v19 = vpop.f32.mrf.mxu0  ;;  %v813_v20 = vpop.f32.mrf.mxu1 }
 0x14a   :  { %931 = vst [vmem:[#allocation2 + $0xb8] sm:$0xff] %v867_v17  ;;  %963 = vst [vmem:[#allocation2 + $0x1b8] sm:$0xff] %v899_v18  ;;  %v686_v21 = vadd.f32 %v1530_v15, %v685_v19  ;;  %v814_v22 = vadd.f32 %v1530_v15, %v813_v20 }
 0x14b   :  { %v687_v23 = vpop.f32.mrf.mxu0  ;;  %v815_v24 = vpop.f32.mrf.mxu1 }
 0x14c   :  { %v868_v25 = vmax.f32 %v686_v21, 0.0  ;;  %v900_v26 = vmax.f32 %v814_v22, 0.0 }
 0x14d   :  { %v688_v27 = vpop.f32.mrf.mxu0  ;;  %v816_v28 = vpop.f32.mrf.mxu1 }
 0x14e   :  { %932 = vst [vmem:[#allocation2 + $0xc0] sm:$0xff] %v868_v25  ;;  %964 = vst [vmem:[#allocation2 + $0x1c0] sm:$0xff] %v900_v26  ;;  %v689_v29 = vadd.f32 %v1530_v15, %v688_v27  ;;  %v817_v30 = vadd.f32 %v1530_v15, %v816_v28 }
 0x14f   :  { %v690_v31 = vpop.f32.mrf.mxu0  ;;  %v818_v32 = vpop.f32.mrf.mxu1 }
 0x150   :  { %v869_v33 = vmax.f32 %v689_v29, 0.0  ;;  %v901_v34 = vmax.f32 %v817_v30, 0.0 }
 0x151   :  { %v693_v35 = vpop.f32.mrf.mxu0  ;;  %v821_v36 = vpop.f32.mrf.mxu1 }
 0x152   :  { %933 = vst [vmem:[#allocation2 + $0xc8] sm:$0xff] %v869_v33  ;;  %965 = vst [vmem:[#allocation2 + $0x1c8] sm:$0xff] %v901_v34  ;;  %v694_v37 = vadd.f32 %v1530_v15, %v693_v35  ;;  %v822_v38 = vadd.f32 %v1530_v15, %v821_v36 }
 0x153   :  { %v695_v39 = vpop.f32.mrf.mxu0  ;;  %v823_v40 = vpop.f32.mrf.mxu1 }
 0x154   :  { %v870_v41 = vmax.f32 %v694_v37, 0.0  ;;  %v902_v42 = vmax.f32 %v822_v38, 0.0 }
 0x155   :  { %v696_v43 = vpop.f32.mrf.mxu0  ;;  %v824_v44 = vpop.f32.mrf.mxu1 }
 0x156   :  { %934 = vst [vmem:[#allocation2 + $0xd0] sm:$0xff] %v870_v41  ;;  %966 = vst [vmem:[#allocation2 + $0x1d0] sm:$0xff] %v902_v42  ;;  %v697_v45 = vadd.f32 %v1530_v15, %v696_v43  ;;  %v825_v46 = vadd.f32 %v1530_v15, %v824_v44 }
 0x157   :  { %v698_v47 = vpop.f32.mrf.mxu0  ;;  %v826_v48 = vpop.f32.mrf.mxu1 }
 0x158   :  { %v871_v49 = vmax.f32 %v697_v45, 0.0  ;;  %v903_v50 = vmax.f32 %v825_v46, 0.0 }
 0x159   :  { %v701_v51 = vpop.f32.mrf.mxu0  ;;  %v829_v52 = vpop.f32.mrf.mxu1 }
 0x15a   :  { %935 = vst [vmem:[#allocation2 + $0xd8] sm:$0xff] %v871_v49  ;;  %967 = vst [vmem:[#allocation2 + $0x1d8] sm:$0xff] %v903_v50  ;;  %v702_v53 = vadd.f32 %v1530_v15, %v701_v51  ;;  %v830_v54 = vadd.f32 %v1530_v15, %v829_v52 }
 0x15b   :  { %v703_v55 = vpop.f32.mrf.mxu0  ;;  %v831_v56 = vpop.f32.mrf.mxu1 }
 0x15c   :  { %v872_v57 = vmax.f32 %v702_v53, 0.0  ;;  %v904_v58 = vmax.f32 %v830_v54, 0.0 }
 0x15d   :  { %v704_v59 = vpop.f32.mrf.mxu0  ;;  %v832_v60 = vpop.f32.mrf.mxu1 }
 0x15e   :  { %936 = vst [vmem:[#allocation2 + $0xe0] sm:$0xff] %v872_v57  ;;  %968 = vst [vmem:[#allocation2 + $0x1e0] sm:$0xff] %v904_v58  ;;  %v705_v61 = vadd.f32 %v1530_v15, %v704_v59  ;;  %v833_v62 = vadd.f32 %v1530_v15, %v832_v60 }
 0x15f   :  { %v706_v63 = vpop.f32.mrf.mxu0  ;;  %v834_v0 = vpop.f32.mrf.mxu1 }
 0x160   :  { %v873_v1 = vmax.f32 %v705_v61, 0.0  ;;  %v905_v2 = vmax.f32 %v833_v62, 0.0 }
 0x161   :  { %v709_v3 = vpop.f32.mrf.mxu0  ;;  %v837_v4 = vpop.f32.mrf.mxu1 }
 0x162   :  { %937 = vst [vmem:[#allocation2 + $0xe8] sm:$0xff] %v873_v1  ;;  %969 = vst [vmem:[#allocation2 + $0x1e8] sm:$0xff] %v905_v2  ;;  %v710_v5 = vadd.f32 %v1530_v15, %v709_v3  ;;  %v838_v6 = vadd.f32 %v1530_v15, %v837_v4 }
 0x163   :  { %v711_v7 = vpop.f32.mrf.mxu0  ;;  %v839_v8 = vpop.f32.mrf.mxu1 }
 0x164   :  { %v874_v9 = vmax.f32 %v710_v5, 0.0  ;;  %v906_v10 = vmax.f32 %v838_v6, 0.0 }
 0x165   :  { %v712_v11 = vpop.f32.mrf.mxu0  ;;  %v840_v12 = vpop.f32.mrf.mxu1 }
 0x166   :  { %938 = vst [vmem:[#allocation2 + $0xf0] sm:$0xff] %v874_v9  ;;  %970 = vst [vmem:[#allocation2 + $0x1f0] sm:$0xff] %v906_v10  ;;  %v713_v13 = vadd.f32 %v1530_v15, %v712_v11  ;;  %v841_v14 = vadd.f32 %v1530_v15, %v840_v12 }
 0x167   :  { %v714_v16 = vpop.f32.mrf.mxu0  ;;  %v842_v17 = vpop.f32.mrf.mxu1 }
 0x168   :  { %v875_v18 = vmax.f32 %v713_v13, 0.0  ;;  %v907_v19 = vmax.f32 %v841_v14, 0.0 }
 0x16a   :  { %939 = vst [vmem:[#allocation2 + $0xf8] sm:$0xff] %v875_v18  ;;  %971 = vst [vmem:[#allocation2 + $0x1f8] sm:$0xff] %v907_v19 }
 0x16b   :  { %1237 = shalt.err (!%p1234_p4)
}
 0x16c   :  { %s1251_s23 = smov 128   ;;  %s1252_s24 = smov 8  }
 0x16d   :  { %983 = dma.vmem_to_hbm [thread:$0]  %s978_s2, 8192, %s1602_s3, [#allocation3], %s1251_s23, %s1251_s23, %s1252_s24  }
 0x16e   :  { %1246 = dma.done.wait [#allocation3], 8192  }
 0x16f   :  { %1247 = vsyncadd [#allocation3], 4294959104 }
 0x170   :  { %987 = vsyncpa [#allocation3], 1 }

</bundles_post_ra>
